<compile_context>
chip_gen: v7x
topology: tpu7x:2x2x1
jax: 0.10.0
libtpu: 0.0.40
codegen_flags: <defaults>
</compile_context>

<pallas_src>
import jax
import jax.numpy as jnp
from jax.experimental import pallas as pl
from jax.experimental.pallas import tpu as pltpu

_LANE = 128             # TPU lane width: last dim of every block.
_MAX_TILE_ROWS = 512    # 512 x 128 x 4 B = 256 KiB per buffer; with
                        # double-buffered input + output this is ~1 MiB of
                        # VMEM, far under v7x's 64 MiB / 32 MiB scoped default.
_SMALL_BYTES = 16 * 1024  # below this, skip the kernel launch entirely.


def _round_up(x: int, m: int) -> int:
    return ((x + m - 1) // m) * m


def _passthrough_kernel(x_ref, o_ref):
    # The Router module does not transform the placement tensor at all; the
    # real work happens in an external C++ solver.  This copy is the entire
    # numerical content of forward(), kept as the hook for future fused work.
    o_ref[...] = x_ref[...]


def _lane_dense_copy(tiles: jax.Array, tile_rows: int) -> jax.Array:
    rows, lanes = tiles.shape
    grid = (rows // tile_rows,)
    return pl.pallas_call(
        _passthrough_kernel,
        out_shape=jax.ShapeDtypeStruct((rows, lanes), tiles.dtype),
        grid=grid,
        in_specs=[pl.BlockSpec((tile_rows, lanes), lambda i: (i, 0))],
        out_specs=pl.BlockSpec((tile_rows, lanes), lambda i: (i, 0)),
        # Output aliases the (temporary, lane-dense) input buffer: no extra
        # HBM allocation; writeback lands in place.
        input_output_aliases={0: 0},
        # Row-tile axis is independent -> shardable across both TCs on v7x;
        # neutral on single-TC v5e/v6e, so safe unconditionally.
        compiler_params=pltpu.CompilerParams(
            dimension_semantics=("parallel",)
        ),
    )(tiles)


def router_forward(placement: jax.Array, *, force_kernel: bool = False) -> jax.Array:
    """Pallas-backed Router.forward.

    Args:
      placement: (num_nodes, num_features) float32 placement solution
                 (stand-in for the contents of `pl_path`).
      force_kernel: run the Pallas path even for tiny placements (testing).

    Returns:
      The placement, unchanged (the PyTorch module returns nothing and
      mutates files on disk; returning the placement keeps the call
      observable/blockable).
    """
    total = placement.size
    nbytes = total * placement.dtype.itemsize
    if not force_kernel and nbytes < _SMALL_BYTES:
        # Identity semantics: skipping the launch is the fastest correct path.
        return placement

    # Lane-dense layout: flatten so the fast axis fills all 128 lanes.
    rows = pl.cdiv(total, _LANE)
    tile_rows = min(_MAX_TILE_ROWS, _round_up(rows, 8))
    padded_rows = _round_up(rows, tile_rows)

    flat = placement.reshape(-1)
    pad = padded_rows * _LANE - total
    if pad:
        flat = jnp.pad(flat, (0, pad))
    tiles = flat.reshape(padded_rows, _LANE)

    out_tiles = _lane_dense_copy(tiles, tile_rows)
    return out_tiles.reshape(-1)[:total].reshape(placement.shape)


if __name__ == "__main__":
    key = jax.random.PRNGKey(0)
    # Small synthetic placement: 32768 nodes x 4 features (x, y, z, orient).
    # 512 KiB -> lane-dense rows = 1024, tile_rows = 512, grid = (2,), so the
    # tiled, pipelined kernel path is actually exercised while staying tiny.
    num_nodes, num_features = 32768, 4
    placement = jax.random.uniform(
        key, (num_nodes, num_features), dtype=jnp.float32
    )

    out = router_forward(placement, force_kernel=True)
    out = jax.block_until_ready(out)

    assert out.shape == (num_nodes, num_features)
    assert out.dtype == jnp.float32
    assert bool(jnp.array_equal(out, placement)), "pass-through mismatch"

    # Tiny-placement fast path (no kernel launch) must also be identity.
    tiny = jax.random.uniform(jax.random.PRNGKey(0), (16, 4), dtype=jnp.float32)
    tiny_out = jax.block_until_ready(router_forward(tiny))
    assert bool(jnp.array_equal(tiny_out, tiny)), "fast-path mismatch"

    print("KERNEL_OK")
</pallas_src>

<mosaic_0001>
module attributes {stable_mosaic.version = 11 : i64} {
  func.func @_passthrough_kernel(%arg0: i32, %arg1: memref<512x128xf32, #tpu.memory_space<vmem>>, %arg2: memref<512x128xf32, #tpu.memory_space<vmem>>) attributes {dimension_semantics = [#tpu.dimension_semantics<parallel>], iteration_bounds = array<i64: 2>, scalar_prefetch = 0 : i64, scratch_operands = 0 : i64, tpu.core_type = #tpu.core_type<tc>, window_params = [{transform_indices = @transform_0, window_bounds = array<i64: 512, 128>}, {transform_indices = @transform_1, window_bounds = array<i64: 512, 128>}]} {
    %c0 = arith.constant 0 : index
    %c0_0 = arith.constant 0 : index
    %0 = vector.load %arg1[%c0, %c0_0] : memref<512x128xf32, #tpu.memory_space<vmem>>, vector<512x128xf32>
    %c0_1 = arith.constant 0 : index
    %c0_2 = arith.constant 0 : index
    %1 = vector.load %arg2[%c0_1, %c0_2] : memref<512x128xf32, #tpu.memory_space<vmem>>, vector<512x128xf32>
    tpu.vector_store %arg2[%c0_1, %c0_2], %0 {strides = array<i32>} : memref<512x128xf32, #tpu.memory_space<vmem>>, vector<512x128xf32>,
    return
  }
  func.func @transform_0(%arg0: i32) -> (i32, i32) {
    %c0_i32 = arith.constant 0 : i32
    %c0_i32_0 = arith.constant 0 : i32
    return %arg0, %c0_i32 : i32, i32
  }
  func.func @transform_1(%arg0: i32) -> (i32, i32) {
    %c0_i32 = arith.constant 0 : i32
    %c0_i32_0 = arith.constant 0 : i32
    return %arg0, %c0_i32 : i32, i32
  }
}

</mosaic_0001>

<bundles_post_ra>
// kernel: tpu_custom_call.1
= control target key start
LH: loop header
LB: loop body
LE: loop exit
PB: predicated region body
PF: predicated region fallthrough
CT: control target
= control target key end

     0   :  { %6 = vsyncpa [#allocation3], 0  ;;  %s827_s0 = inlined_call_operand.hbm [shape: f32[1024,128], index: 0, kind: input, shape index: {}, may-alias: {0,1}]   ;;  %s828_s1 = inlined_call_operand.hbm [shape: f32[1024,128], index: 1, kind: output, shape index: {}, may-alias: {0,1}]  }
   0x1   :  { %8 = vsyncpa [#allocation3 + $0x1], 0 }
   0x2   :  { %9 = vsyncpa [#allocation4], 0 }
   0x3   :  { %11 = vsyncpa [#allocation4 + $0x1], 0  ;;  %s532_s6 = smov 0   ;;  %s534_s7 = smov 0  }
   0x4   :  { %s536_s8 = smov 0   ;;  %s538_s9 = smov 0  }
   0x5 LB: > { %s553_s10 = sadd.s32 4294967295, %s514_s9   ;;  %s352_s11 = sadd.s32 4294967294, %s514_s9   ;;  %s514_s9 = sphi %s538_s9, %s841_s9   ;;  %s510_s8 = sphi %s536_s8, %s840_s8   ;;  %s506_s7 = sphi %s534_s7, %s839_s7   ;;  %s502_s6 = sphi %s532_s6, %s838_s6  }
   0x6   : > { %s557_s12 = sadd.s32 1, %s514_s9   ;;  %s24_s13 = sadd.s32 1, %s510_s8 }
   0x7   : > { %s21_s14 = ssub.s32 %s514_s9, %s557_s12  ;;  %p31_p0 = scmp.ne.s32.totalorder %s510_s8, %s506_s7 }
   0x8   : > { %p22_p1 = scmp.eq.s32.totalorder %s21_s14, 0  ;;  %p32_p2 = scmp.eq.s32.totalorder %s514_s9, 0 }
   0x9   : > { %p37_p3 = scmp.ne.s32.totalorder %s506_s7, %s502_s6  ;;  %p38_p4 = scmp.eq.s32.totalorder %s553_s10, 0 }
   0xa   : > { %s569_s15 = scalar_select %p22_p1, %s510_s8, %s24_s13  }
   0xb   : > { %p571_p5 = por %p32_p2, %p31_p0  ;;  %p575_p6 = por %p38_p4, %p37_p3 }
   0xc   : > { %p61_p7 = scmp.eq.s32.totalorder %s553_s10, 1  ;;  %p67_p8 = scmp.eq.s32.totalorder %s352_s11, 1 }
   0xd   : > { %p380_p10 = scmp.lt.s32.totalorder %s514_s9, 2  ;;  %s87_s20 = sand.u32 1, %s510_s8  }
   0xe   : > { %p582_p11 = por %p61_p7, %p31_p0  ;;  %p586_p12 = por %p67_p8, %p37_p3 }
   0xf   : > { %s366_s21 = sshll.u32 %s514_s9, 13  ;;  %s355_s22 = sshll.u32 %s87_s20, 9 }
  0x10   : > { %s832_s18 = scalar_select %p582_p11, 1, 0 }
  0x11   : > { %s833_s19 = scalar_select %p586_p12, 1, 0 }
  0x12   : > { %s595_s25 = scalar_lea.hbm %s827_s0, %s366_s21  ;;  %s91_s26 = scalar_lea.vmem [#allocation2], %s355_s22 }
  0x13   : > { %s98_s27 = sshll.u32 %s91_s26, 4  ;;  %p599_p13 = pnand %p380_p10, %p571_p5  ;;  %s603_s27 = int_to_ptr.vmem [resolvable:$true] %s98_s27 }
  0x14   : > { %s605_s29 = scalar_lea.sflag [#allocation3], %s87_s20  ;;  %s418_s30 = scalar_lea.hbm %s595_s25, 8192 }
  0x15   : > { %p419_p0 = scmp.ne.s32.totalorder %s595_s25, %s418_s30  ;;  %p420_p1 = pneg %p599_p13 }
  0x16   : > { %s423_s4 = scalar_lea.hbm %s827_s0, 16384  ;;  %p424_p4 = scmp.lt.u32.totalorder %s595_s25, %s827_s0 }
  0x17   : > { %p421_p2 = pnand %p420_p1, %p419_p0  ;;  %p425_p5 = scmp.lt.u32.totalorder %s423_s4, %s418_s30 }
  0x18   : > { %p427_p8 = scmp.lt.u32.totalorder %s418_s30, %s595_s25 }
  0x19   : > { %p422_p3 = pneg %p421_p2  ;;  %p426_p7 = por %p425_p5, %p424_p4 }
  0x1b   : > { %p428_p10 = por %p427_p8, %p426_p7 }
  0x1d   : > { %p429_p9 = pnand %p428_p10, %p422_p3 }
  0x1f   : > { %432 = shalt.err (!%p429_p9)
}
  0x20   : > { %s433_s13 = scalar_lea.vmem %s603_s27, 8192  ;;  %s516_s14 = smov [#allocation2]  }
  0x21   : > { %p434_p0 = scmp.ne.s32.totalorder %s603_s27, %s433_s13  ;;  %s438_s16 = sshll.u32 %s516_s14, 4  ;;  %s439_s16 = int_to_ptr.vmem [resolvable:$false] %s438_s16 }
  0x22   : > { %s440_s20 = scalar_lea.vmem %s439_s16, 16384  ;;  %p441_p11 = scmp.lt.s32.totalorder %s603_s27, %s439_s16 }
  0x23   : > { %p436_p2 = pnand %p434_p0, %p420_p1  ;;  %p442_p4 = scmp.lt.s32.totalorder %s440_s20, %s433_s13 }
  0x25   : > { %p437_p12 = pneg %p436_p2  ;;  %p443_p5 = por %p442_p4, %p441_p11 }
  0x27   : > { %p444_p7 = pnand %p443_p5, %p437_p12 }
  0x29   : > { %447 = shalt.err (!%p444_p7)
}
  0x2a   : > { %s517_s21 = smov 128   ;;  %s518_s22 = smov 8  }
  0x2b   : > { %375 = dma.hbm_to_vmem [thread:$0]  (!%p599_p13), %s595_s25, 8192, %s603_s27, %s605_s29, %s517_s21, %s517_s21, %s518_s22  }
  0x2c   : > { %p358_p9 = scmp.ge.s32.totalorder %s514_s9, 1  ;;  %p106_p1 = scmp.lt.s32.totalorder %s514_s9, 3 }
  0x2e   : > { %p107_p3 = pnand %p358_p9, %p106_p1 }
  0x2f   : > { %s636_s23 = sand.u32 (!%p107_p3), 1, %s506_s7  }
  0x30   : > { %110 = sbr.rel (%p107_p3) target bundleno = 103 (0x67), region = 24  ;;  %s359_s24 = sshll.u32 (!%p107_p3), %s636_s23, 9 }
  0x31   : > { %s113_s26 = scalar_lea.sflag (!%p107_p3), [#allocation3], %s636_s23  ;;  %s640_s30 = scalar_lea.vmem (!%p107_p3), [#allocation2], %s359_s24 }
  0x37   : > { %493 = dma.done.wait (%p575_p6), %s113_s26, 8192  }
  0x38   : > { %495 = vsyncadd (%p575_p6), %s113_s26, 4294959104  ;;  %v137_v0 = vld [vmem:[%s640_s30] sm:$0xff]  ;;  %v138_v1 = vld [vmem:[%s640_s30 + $0x8] sm:$0xff]  ;;  %s649_s25 = scalar_lea.vmem [#allocation5], %s359_s24  ;;  %s367_s17 = sshll.u32 %s553_s10, 13 }
  0x39   : > { %v139_v2 = vld [vmem:[%s640_s30 + $0x10] sm:$0xff]  ;;  %201 = vst [vmem:[%s649_s25] sm:$0xff] %v137_v0  ;;  %202 = vst [vmem:[%s649_s25 + $0x8] sm:$0xff] %v138_v1  ;;  %v140_v3 = vld [vmem:[%s640_s30 + $0x18] sm:$0xff]  ;;  %s279_s27 = sshll.u32 %s649_s25, 4  ;;  %s770_s29 = scalar_lea.hbm %s828_s1, %s367_s17  ;;  %s772_s27 = int_to_ptr.vmem [resolvable:$true] %s279_s27 }
  0x3a   : > { %203 = vst [vmem:[%s649_s25 + $0x10] sm:$0xff] %v139_v2  ;;  %v141_v4 = vld [vmem:[%s640_s30 + $0x20] sm:$0xff]  ;;  %v142_v5 = vld [vmem:[%s640_s30 + $0x28] sm:$0xff]  ;;  %204 = vst [vmem:[%s649_s25 + $0x18] sm:$0xff] %v140_v3  ;;  %s266_s2 = scalar_lea.sflag [#allocation4], %s636_s23  ;;  %s448_s3 = scalar_lea.vmem %s772_s27, 8192 }
  0x3b   : > { %205 = vst [vmem:[%s649_s25 + $0x20] sm:$0xff] %v141_v4  ;;  %206 = vst [vmem:[%s649_s25 + $0x28] sm:$0xff] %v142_v5  ;;  %v143_v6 = vld [vmem:[%s640_s30 + $0x30] sm:$0xff]  ;;  %v144_v7 = vld [vmem:[%s640_s30 + $0x38] sm:$0xff]  ;;  %p449_p6 = scmp.ne.s32.totalorder %s772_s27, %s448_s3  ;;  %p835_p11 = scmp.ne.s32.totalorder %s832_s18, 0 }
  0x3c   : > { %v145_v8 = vld [vmem:[%s640_s30 + $0x40] sm:$0xff]  ;;  %207 = vst [vmem:[%s649_s25 + $0x30] sm:$0xff] %v143_v6  ;;  %208 = vst [vmem:[%s649_s25 + $0x38] sm:$0xff] %v144_v7  ;;  %v146_v9 = vld [vmem:[%s640_s30 + $0x48] sm:$0xff]  ;;  %s519_s4 = smov [#allocation5]  }
  0x3d   : > { %209 = vst [vmem:[%s649_s25 + $0x40] sm:$0xff] %v145_v8  ;;  %v147_v10 = vld [vmem:[%s640_s30 + $0x50] sm:$0xff]  ;;  %v148_v11 = vld [vmem:[%s640_s30 + $0x58] sm:$0xff]  ;;  %210 = vst [vmem:[%s649_s25 + $0x48] sm:$0xff] %v146_v9  ;;  %p450_p12 = pnand %p449_p6, %p835_p11  ;;  %s452_s5 = sshll.u32 %s519_s4, 4  ;;  %s453_s5 = int_to_ptr.vmem [resolvable:$false] %s452_s5 }
  0x3e   : > { %211 = vst [vmem:[%s649_s25 + $0x50] sm:$0xff] %v147_v10  ;;  %212 = vst [vmem:[%s649_s25 + $0x58] sm:$0xff] %v148_v11  ;;  %v149_v12 = vld [vmem:[%s640_s30 + $0x60] sm:$0xff]  ;;  %v150_v13 = vld [vmem:[%s640_s30 + $0x68] sm:$0xff]  ;;  %s454_s11 = scalar_lea.vmem %s453_s5, 16384  ;;  %p455_p8 = scmp.lt.s32.totalorder %s772_s27, %s453_s5 }
  0x3f   : > { %v151_v14 = vld [vmem:[%s640_s30 + $0x70] sm:$0xff]  ;;  %213 = vst [vmem:[%s649_s25 + $0x60] sm:$0xff] %v149_v12  ;;  %214 = vst [vmem:[%s649_s25 + $0x68] sm:$0xff] %v150_v13  ;;  %v152_v15 = vld [vmem:[%s640_s30 + $0x78] sm:$0xff]  ;;  %p451_p13 = pneg %p450_p12  ;;  %p456_p10 = scmp.lt.s32.totalorder %s454_s11, %s448_s3 }
  0x40   : > { %215 = vst [vmem:[%s649_s25 + $0x70] sm:$0xff] %v151_v14  ;;  %v153_v16 = vld [vmem:[%s640_s30 + $0x80] sm:$0xff]  ;;  %v154_v17 = vld [vmem:[%s640_s30 + $0x88] sm:$0xff]  ;;  %216 = vst [vmem:[%s649_s25 + $0x78] sm:$0xff] %v152_v15 }
  0x41   : > { %217 = vst [vmem:[%s649_s25 + $0x80] sm:$0xff] %v153_v16  ;;  %218 = vst [vmem:[%s649_s25 + $0x88] sm:$0xff] %v154_v17  ;;  %v155_v18 = vld [vmem:[%s640_s30 + $0x90] sm:$0xff]  ;;  %v156_v19 = vld [vmem:[%s640_s30 + $0x98] sm:$0xff]  ;;  %p457_p0 = por %p456_p10, %p455_p8 }
  0x42   : > { %v157_v20 = vld [vmem:[%s640_s30 + $0xa0] sm:$0xff]  ;;  %219 = vst [vmem:[%s649_s25 + $0x90] sm:$0xff] %v155_v18  ;;  %220 = vst [vmem:[%s649_s25 + $0x98] sm:$0xff] %v156_v19  ;;  %v158_v21 = vld [vmem:[%s640_s30 + $0xa8] sm:$0xff] }
  0x43   : > { %221 = vst [vmem:[%s649_s25 + $0xa0] sm:$0xff] %v157_v20  ;;  %v159_v22 = vld [vmem:[%s640_s30 + $0xb0] sm:$0xff]  ;;  %v160_v23 = vld [vmem:[%s640_s30 + $0xb8] sm:$0xff]  ;;  %222 = vst [vmem:[%s649_s25 + $0xa8] sm:$0xff] %v158_v21  ;;  %p458_p2 = pnand %p457_p0, %p451_p13 }
  0x44   : > { %223 = vst [vmem:[%s649_s25 + $0xb0] sm:$0xff] %v159_v22  ;;  %224 = vst [vmem:[%s649_s25 + $0xb8] sm:$0xff] %v160_v23  ;;  %v161_v24 = vld [vmem:[%s640_s30 + $0xc0] sm:$0xff]  ;;  %v162_v25 = vld [vmem:[%s640_s30 + $0xc8] sm:$0xff] }
  0x45   : > { %v163_v26 = vld [vmem:[%s640_s30 + $0xd0] sm:$0xff]  ;;  %225 = vst [vmem:[%s649_s25 + $0xc0] sm:$0xff] %v161_v24  ;;  %226 = vst [vmem:[%s649_s25 + $0xc8] sm:$0xff] %v162_v25  ;;  %v164_v27 = vld [vmem:[%s640_s30 + $0xd8] sm:$0xff] }
  0x46   : > { %227 = vst [vmem:[%s649_s25 + $0xd0] sm:$0xff] %v163_v26  ;;  %v165_v28 = vld [vmem:[%s640_s30 + $0xe0] sm:$0xff]  ;;  %v166_v29 = vld [vmem:[%s640_s30 + $0xe8] sm:$0xff]  ;;  %228 = vst [vmem:[%s649_s25 + $0xd8] sm:$0xff] %v164_v27 }
  0x47   : > { %229 = vst [vmem:[%s649_s25 + $0xe0] sm:$0xff] %v165_v28  ;;  %230 = vst [vmem:[%s649_s25 + $0xe8] sm:$0xff] %v166_v29  ;;  %v167_v30 = vld [vmem:[%s640_s30 + $0xf0] sm:$0xff]  ;;  %v168_v31 = vld [vmem:[%s640_s30 + $0xf8] sm:$0xff] }
  0x48   : > { %v169_v32 = vld [vmem:[%s640_s30 + $0x100] sm:$0xff]  ;;  %231 = vst [vmem:[%s649_s25 + $0xf0] sm:$0xff] %v167_v30  ;;  %232 = vst [vmem:[%s649_s25 + $0xf8] sm:$0xff] %v168_v31  ;;  %v170_v33 = vld [vmem:[%s640_s30 + $0x108] sm:$0xff] }
  0x49   : > { %233 = vst [vmem:[%s649_s25 + $0x100] sm:$0xff] %v169_v32  ;;  %v171_v34 = vld [vmem:[%s640_s30 + $0x110] sm:$0xff]  ;;  %v172_v35 = vld [vmem:[%s640_s30 + $0x118] sm:$0xff]  ;;  %234 = vst [vmem:[%s649_s25 + $0x108] sm:$0xff] %v170_v33 }
  0x4a   : > { %235 = vst [vmem:[%s649_s25 + $0x110] sm:$0xff] %v171_v34  ;;  %236 = vst [vmem:[%s649_s25 + $0x118] sm:$0xff] %v172_v35  ;;  %v173_v36 = vld [vmem:[%s640_s30 + $0x120] sm:$0xff]  ;;  %v174_v37 = vld [vmem:[%s640_s30 + $0x128] sm:$0xff] }
  0x4b   : > { %v175_v38 = vld [vmem:[%s640_s30 + $0x130] sm:$0xff]  ;;  %237 = vst [vmem:[%s649_s25 + $0x120] sm:$0xff] %v173_v36  ;;  %238 = vst [vmem:[%s649_s25 + $0x128] sm:$0xff] %v174_v37  ;;  %v176_v39 = vld [vmem:[%s640_s30 + $0x138] sm:$0xff] }
  0x4c   : > { %239 = vst [vmem:[%s649_s25 + $0x130] sm:$0xff] %v175_v38  ;;  %v177_v40 = vld [vmem:[%s640_s30 + $0x140] sm:$0xff]  ;;  %v178_v41 = vld [vmem:[%s640_s30 + $0x148] sm:$0xff]  ;;  %240 = vst [vmem:[%s649_s25 + $0x138] sm:$0xff] %v176_v39 }
  0x4d   : > { %241 = vst [vmem:[%s649_s25 + $0x140] sm:$0xff] %v177_v40  ;;  %242 = vst [vmem:[%s649_s25 + $0x148] sm:$0xff] %v178_v41  ;;  %v179_v42 = vld [vmem:[%s640_s30 + $0x150] sm:$0xff]  ;;  %v180_v43 = vld [vmem:[%s640_s30 + $0x158] sm:$0xff] }
  0x4e   : > { %v181_v44 = vld [vmem:[%s640_s30 + $0x160] sm:$0xff]  ;;  %243 = vst [vmem:[%s649_s25 + $0x150] sm:$0xff] %v179_v42  ;;  %244 = vst [vmem:[%s649_s25 + $0x158] sm:$0xff] %v180_v43  ;;  %v182_v45 = vld [vmem:[%s640_s30 + $0x168] sm:$0xff] }
  0x4f   : > { %245 = vst [vmem:[%s649_s25 + $0x160] sm:$0xff] %v181_v44  ;;  %v183_v46 = vld [vmem:[%s640_s30 + $0x170] sm:$0xff]  ;;  %v184_v47 = vld [vmem:[%s640_s30 + $0x178] sm:$0xff]  ;;  %246 = vst [vmem:[%s649_s25 + $0x168] sm:$0xff] %v182_v45 }
  0x50   : > { %247 = vst [vmem:[%s649_s25 + $0x170] sm:$0xff] %v183_v46  ;;  %248 = vst [vmem:[%s649_s25 + $0x178] sm:$0xff] %v184_v47  ;;  %v185_v48 = vld [vmem:[%s640_s30 + $0x180] sm:$0xff]  ;;  %v186_v49 = vld [vmem:[%s640_s30 + $0x188] sm:$0xff] }
  0x51   : > { %v187_v50 = vld [vmem:[%s640_s30 + $0x190] sm:$0xff]  ;;  %249 = vst [vmem:[%s649_s25 + $0x180] sm:$0xff] %v185_v48  ;;  %250 = vst [vmem:[%s649_s25 + $0x188] sm:$0xff] %v186_v49  ;;  %v188_v51 = vld [vmem:[%s640_s30 + $0x198] sm:$0xff] }
  0x52   : > { %251 = vst [vmem:[%s649_s25 + $0x190] sm:$0xff] %v187_v50  ;;  %v189_v52 = vld [vmem:[%s640_s30 + $0x1a0] sm:$0xff]  ;;  %v190_v53 = vld [vmem:[%s640_s30 + $0x1a8] sm:$0xff]  ;;  %252 = vst [vmem:[%s649_s25 + $0x198] sm:$0xff] %v188_v51 }
  0x53   : > { %253 = vst [vmem:[%s649_s25 + $0x1a0] sm:$0xff] %v189_v52  ;;  %254 = vst [vmem:[%s649_s25 + $0x1a8] sm:$0xff] %v190_v53  ;;  %v191_v54 = vld [vmem:[%s640_s30 + $0x1b0] sm:$0xff]  ;;  %v192_v55 = vld [vmem:[%s640_s30 + $0x1b8] sm:$0xff] }
  0x54   : > { %v193_v56 = vld [vmem:[%s640_s30 + $0x1c0] sm:$0xff]  ;;  %255 = vst [vmem:[%s649_s25 + $0x1b0] sm:$0xff] %v191_v54  ;;  %256 = vst [vmem:[%s649_s25 + $0x1b8] sm:$0xff] %v192_v55  ;;  %v194_v57 = vld [vmem:[%s640_s30 + $0x1c8] sm:$0xff] }
  0x55   : > { %257 = vst [vmem:[%s649_s25 + $0x1c0] sm:$0xff] %v193_v56  ;;  %v195_v58 = vld [vmem:[%s640_s30 + $0x1d0] sm:$0xff]  ;;  %v196_v59 = vld [vmem:[%s640_s30 + $0x1d8] sm:$0xff]  ;;  %258 = vst [vmem:[%s649_s25 + $0x1c8] sm:$0xff] %v194_v57 }
  0x56   : > { %259 = vst [vmem:[%s649_s25 + $0x1d0] sm:$0xff] %v195_v58  ;;  %260 = vst [vmem:[%s649_s25 + $0x1d8] sm:$0xff] %v196_v59  ;;  %v197_v60 = vld [vmem:[%s640_s30 + $0x1e0] sm:$0xff]  ;;  %v198_v61 = vld [vmem:[%s640_s30 + $0x1e8] sm:$0xff] }
  0x57   : > { %v199_v62 = vld [vmem:[%s640_s30 + $0x1f0] sm:$0xff]  ;;  %261 = vst [vmem:[%s649_s25 + $0x1e0] sm:$0xff] %v197_v60  ;;  %262 = vst [vmem:[%s649_s25 + $0x1e8] sm:$0xff] %v198_v61  ;;  %v200_v63 = vld [vmem:[%s640_s30 + $0x1f8] sm:$0xff] }
  0x58   : > { %263 = vst [vmem:[%s649_s25 + $0x1f0] sm:$0xff] %v199_v62  ;;  %264 = vst [vmem:[%s649_s25 + $0x1f8] sm:$0xff] %v200_v63 }
  0x59   : > { %461 = shalt.err (!%p458_p2)
}
  0x5a   : > { %s462_s13 = scalar_lea.hbm %s770_s29, 8192  ;;  %s466_s20 = scalar_lea.hbm %s828_s1, 16384 }
  0x5b   : > { %p463_p4 = scmp.ne.s32.totalorder %s770_s29, %s462_s13  ;;  %p467_p9 = scmp.lt.u32.totalorder %s770_s29, %s828_s1 }
  0x5c   : > { %p468_p1 = scmp.lt.u32.totalorder %s466_s20, %s462_s13  ;;  %p470_p6 = scmp.lt.u32.totalorder %s462_s13, %s770_s29 }
  0x5d   : > { %p464_p5 = pnand %p463_p4, %p835_p11 }
  0x5e   : > { %p469_p3 = por %p468_p1, %p467_p9 }
  0x5f   : > { %p465_p7 = pneg %p464_p5 }
  0x60   : > { %p471_p12 = por %p470_p6, %p469_p3 }
  0x62   : > { %p472_p13 = pnand %p471_p12, %p465_p7 }
  0x64   : > { %475 = shalt.err (!%p472_p13)
}
  0x65   : > { %s520_s24 = smov 128   ;;  %s521_s26 = smov 8  }
  0x66   : > { %370 = dma.vmem_to_hbm [thread:$0]  (%p835_p11), %s772_s27, 8192, %s770_s29, %s266_s2, %s520_s24, %s520_s24, %s521_s26  }
  0x67 PF: > { %s294_s30 = sand.u32 1, %s502_s6   ;;  %p836_p8 = scmp.ne.s32.totalorder %s833_s19, 0 }
  0x68   : > { %p837_p10 = scmp.ge.s32.totalorder %s514_s9, 2  ;;  %s295_s25 = scalar_lea.sflag [#allocation4], %s294_s30 }
  0x6a   : > { %p377_p0 = pnand %p837_p10, %p836_p8 }
  0x6c   : > { %497 = dma.done.wait (!%p377_p0), %s295_s25, 8192  }
  0x6d   : > { %499 = vsyncadd (!%p377_p0), %s295_s25, 4294959104  ;;  %p14_p2 = scmp.ge.s32.totalorder %s557_s12, 4   ;;  %s838_s6 = smov %s506_s7 }
  0x6e   : > { %s839_s7 = smov %s510_s8  ;;  %s840_s8 = smov %s569_s15 }
  0x6f   : > { %s841_s9 = smov %s557_s12  ;;  %16 = sbr.rel (!%p14_p2) target bundleno = 5 (0x5), region = 69 }
  0x76   :  { %300 = vsyncpa [#allocation3], 1 }
  0x77   :  { %302 = vsyncpa [#allocation3 + $0x1], 1 }
  0x78   :  { %303 = vsyncpa [#allocation4], 1 }
  0x79   :  { %305 = vsyncpa [#allocation4 + $0x1], 1 }

</bundles_post_ra>
